<compile_context>
chip_gen: v6e
topology: v6e:2x2x1
jax: 0.10.0
libtpu: 0.0.40
codegen_flags: <defaults>
</compile_context>

<pallas_src>
import jax
import jax.numpy as jnp
from jax.experimental import pallas as pl
from jax.experimental.pallas import tpu as pltpu


def _pre_kernel(x_ref, w1_ref, b1_ref, w2_ref, b2_ref, w3_ref, b3_ref, o_ref):
    # In-kernel cast of x to the compute dtype (bf16 by default). Keeping x f32 at the
    # pallas_call boundary halves HBM traffic on the x path vs. a wrapper-side cast.
    x = x_ref[...].astype(w1_ref.dtype)

    # l1 + ReLU  (MXU matmul, f32 accumulation; bias/ReLU in f32 on the VPU)
    h1 = jnp.dot(x, w1_ref[...], preferred_element_type=jnp.float32)
    h1 = jnp.maximum(h1 + b1_ref[...], 0.0)

    # l2 + ReLU  (cast back to the weight dtype so the bf16 path stays on the bf16 MXU)
    h2 = jnp.dot(h1.astype(w2_ref.dtype), w2_ref[...],
                 preferred_element_type=jnp.float32)
    h2 = jnp.maximum(h2 + b2_ref[...], 0.0)

    # l3 + clamp(-5000, 17000)
    out = jnp.dot(h2.astype(w3_ref.dtype), w3_ref[...],
                  preferred_element_type=jnp.float32) + b3_ref[...]
    o_ref[...] = jnp.clip(out, -5000.0, 17000.0).astype(o_ref.dtype)


def _round_up(n, m):
    return ((n + m - 1) // m) * m


def pre_forward(x, params, *, use_bf16=True, tile_b_max=4096):
    """x: [batch, input_dim] float32. params: dict of w1,b1,w2,b2,w3,b3.

    use_bf16: run the matmuls in bf16 on the MXU with f32 accumulation (default).
    tile_b_max: cap on batch-tile rows. 4096 is safe on v5e/v6e/v7x with the raised
                VMEM limit below; 8192 is viable on v6e if the limit is raised further.
    """
    w1, b1 = params["w1"], params["b1"]
    w2, b2 = params["w2"], params["b2"]
    w3, b3 = params["w3"], params["b3"]

    batch, in_dim = x.shape
    hidden = w1.shape[1]
    out_dim = w3.shape[1]

    compute_dtype = jnp.bfloat16 if use_bf16 else jnp.float32
    # Weights are tiny (<=128x128): casting them once in the wrapper is negligible.
    # x is deliberately NOT cast here (cast happens inside the kernel).
    w1c, w2c, w3c = (w.astype(compute_dtype) for w in (w1, w2, w3))
    b1f, b2f, b3f = (b.astype(jnp.float32) for b in (b1, b2, b3))

    # Batch tiling:
    #   * batch <= 1024: one full block -> zero per-grid-step overhead.
    #   * batch  > 1024: at least 2 grid steps so the "parallel" axis can shard across
    #     both v7x TensorCores and prefetch/writeback pipelining engages. Tile rounded
    #     up to a multiple of 256 (sublane- and MXU-row friendly). Partial last tile is
    #     handled by Pallas (OOB reads padded, OOB stores masked; rows are independent).
    if batch <= 1024:
        tile_b = batch
    else:
        tile_b = min(tile_b_max, _round_up(pl.cdiv(batch, 2), 256))
    grid = (pl.cdiv(batch, tile_b),)

    # VMEM budget (lane-padded, double-buffered x/out + weights + pipeline headroom).
    def _lane_pad(n):
        return _round_up(max(n, 1), 128)

    wbytes = 2 if use_bf16 else 4
    vmem_est = (
        2 * tile_b * _lane_pad(in_dim) * 4        # x blocks (f32, double-buffered)
        + 2 * tile_b * _lane_pad(out_dim) * 4     # out blocks (f32, double-buffered)
        + 2 * (in_dim * hidden + hidden * hidden + hidden * out_dim) * wbytes
        + 2 * 3 * _lane_pad(hidden) * 4           # biases (lane-padded)
    )
    # Headroom for compiler-managed intermediates (h1/h2 tiles etc.); cap below v7x's
    # 64 MiB physical per-TC VMEM.
    vmem_limit = min(_round_up(2 * vmem_est + (8 << 20), 1 << 20), 56 << 20)

    n_wparams = in_dim * hidden + hidden * hidden + hidden * out_dim
    cost = pl.CostEstimate(
        flops=2 * batch * n_wparams,
        transcendentals=0,
        bytes_accessed=(batch * in_dim * 4            # x (f32 at the boundary)
                        + batch * out_dim * 4         # out
                        + n_wparams * wbytes          # weights
                        + (2 * hidden + out_dim) * 4),  # biases
    )

    def batch_tiled(last_dim):
        return pl.BlockSpec((tile_b, last_dim), lambda i: (i, 0))

    def resident(shape):
        # Constant block index -> fetched once, stays VMEM-resident for all grid steps.
        return pl.BlockSpec(shape, lambda i: (0, 0))

    return pl.pallas_call(
        _pre_kernel,
        out_shape=jax.ShapeDtypeStruct((batch, out_dim), jnp.float32),
        grid=grid,
        in_specs=[
            batch_tiled(in_dim),
            resident(w1c.shape), resident(b1f.shape),
            resident(w2c.shape), resident(b2f.shape),
            resident(w3c.shape), resident(b3f.shape),
        ],
        out_specs=batch_tiled(out_dim),
        compiler_params=pltpu.CompilerParams(
            dimension_semantics=("parallel",),   # v7x: shard batch tiles across both TCs
            vmem_limit_bytes=vmem_limit,
        ),
        cost_estimate=cost,
    )(x, w1c, b1f, w2c, b2f, w3c, b3f)


def init_params(key, input_dim, output_dim, hidden=128):
    """Deterministic init mimicking nn.Linear's uniform(-1/sqrt(fan_in), 1/sqrt(fan_in))."""
    ks = jax.random.split(key, 6)

    def linear(kw, kb, fan_in, fan_out):
        bound = 1.0 / jnp.sqrt(jnp.float32(fan_in))
        w = jax.random.uniform(kw, (fan_in, fan_out), jnp.float32, -bound, bound)
        b = jax.random.uniform(kb, (1, fan_out), jnp.float32, -bound, bound)
        return w, b

    w1, b1 = linear(ks[0], ks[1], input_dim, hidden)
    w2, b2 = linear(ks[2], ks[3], hidden, hidden)
    w3, b3 = linear(ks[4], ks[5], hidden, output_dim)
    return {"w1": w1, "b1": b1, "w2": w2, "b2": b2, "w3": w3, "b3": b3}


def _reference(x, params):
    h1 = jnp.maximum(x @ params["w1"] + params["b1"], 0.0)
    h2 = jnp.maximum(h1 @ params["w2"] + params["b2"], 0.0)
    return jnp.clip(h2 @ params["w3"] + params["b3"], -5000.0, 17000.0)


if __name__ == "__main__":
    key = jax.random.PRNGKey(0)
    k_x, k_x2, k_p = jax.random.split(key, 3)

    batch, input_dim, output_dim = 8, 16, 4
    x = jax.random.normal(k_x, (batch, input_dim), jnp.float32)
    params = init_params(k_p, input_dim, output_dim)
    ref = _reference(x, params)

    # Default bf16 MXU path (f32 accumulation) — looser tolerance vs. the f32 reference.
    out = jax.block_until_ready(pre_forward(x, params))
    assert out.shape == (batch, output_dim)
    assert jnp.allclose(out, ref, atol=5e-1, rtol=5e-2)

    # f32 path (bitwise semantics of the PyTorch module) — tight tolerance.
    out_f32 = jax.block_until_ready(pre_forward(x, params, use_bf16=False))
    assert jnp.allclose(out_f32, ref, atol=1e-4, rtol=1e-4)

    # Exercise the multi-step grid path (>1024 rows -> >=2 batch tiles, partial last tile).
    xb = jax.random.normal(k_x2, (1300, input_dim), jnp.float32)
    outb = jax.block_until_ready(pre_forward(xb, params, use_bf16=False))
    refb = _reference(xb, params)
    assert jnp.allclose(outb, refb, atol=1e-4, rtol=1e-4)

    print("KERNEL_OK")
</pallas_src>

<mosaic_0001>
module attributes {stable_mosaic.version = 11 : i64} {
  func.func @_pre_kernel(%arg0: i32, %arg1: memref<8x16xf32, #tpu.memory_space<vmem>>, %arg2: memref<16x128xbf16, #tpu.memory_space<vmem>>, %arg3: memref<1x128xf32, #tpu.memory_space<vmem>>, %arg4: memref<128x128xbf16, #tpu.memory_space<vmem>>, %arg5: memref<1x128xf32, #tpu.memory_space<vmem>>, %arg6: memref<128x4xbf16, #tpu.memory_space<vmem>>, %arg7: memref<1x4xf32, #tpu.memory_space<vmem>>, %arg8: memref<8x4xf32, #tpu.memory_space<vmem>>) attributes {dimension_semantics = [#tpu.dimension_semantics<parallel>], iteration_bounds = array<i64: 1>, scalar_prefetch = 0 : i64, scratch_operands = 0 : i64, tpu.core_type = #tpu.core_type<tc>, window_params = [{transform_indices = @transform_0, window_bounds = array<i64: 8, 16>}, {pipeline_mode = #tpu.pipeline_mode<synchronous>, transform_indices = @transform_1, window_bounds = array<i64: 16, 128>}, {pipeline_mode = #tpu.pipeline_mode<synchronous>, transform_indices = @transform_2, window_bounds = array<i64: 1, 128>}, {pipeline_mode = #tpu.pipeline_mode<synchronous>, transform_indices = @transform_3, window_bounds = array<i64: 128, 128>}, {pipeline_mode = #tpu.pipeline_mode<synchronous>, transform_indices = @transform_4, window_bounds = array<i64: 1, 128>}, {pipeline_mode = #tpu.pipeline_mode<synchronous>, transform_indices = @transform_5, window_bounds = array<i64: 128, 4>}, {pipeline_mode = #tpu.pipeline_mode<synchronous>, transform_indices = @transform_6, window_bounds = array<i64: 1, 4>}, {transform_indices = @transform_7, window_bounds = array<i64: 8, 4>}]} {
    %c0 = arith.constant 0 : index
    %c0_0 = arith.constant 0 : index
    %0 = vector.load %arg1[%c0, %c0_0] : memref<8x16xf32, #tpu.memory_space<vmem>>, vector<8x16xf32>
    %1 = arith.truncf %0 : vector<8x16xf32> to vector<8x16xbf16>
    %c0_1 = arith.constant 0 : index
    %c0_2 = arith.constant 0 : index
    %2 = vector.load %arg2[%c0_1, %c0_2] : memref<16x128xbf16, #tpu.memory_space<vmem>>, vector<16x128xbf16>
    %cst = arith.constant dense<0.000000e+00> : vector<8x128xf32>
    %3 = tpu.matmul %1, %2, %cst {dimension_numbers = #tpu.dot_dimension_numbers<[1], [0], [0], [1], [0, 0, 1, 1], [], []>} : vector<8x16xbf16>, vector<16x128xbf16>, vector<8x128xf32> -> vector<8x128xf32>
    %c0_3 = arith.constant 0 : index
    %c0_4 = arith.constant 0 : index
    %4 = vector.load %arg3[%c0_3, %c0_4] : memref<1x128xf32, #tpu.memory_space<vmem>>, vector<1x128xf32>
    %5 = vector.broadcast %4 : vector<1x128xf32> to vector<8x128xf32>
    %6 = arith.addf %3, %5 : vector<8x128xf32>
    %cst_5 = arith.constant 0.000000e+00 : f32
    %7 = vector.broadcast %cst_5 : f32 to vector<8x128xf32>
    %8 = arith.maximumf %6, %7 : vector<8x128xf32>
    %9 = arith.truncf %8 : vector<8x128xf32> to vector<8x128xbf16>
    %c0_6 = arith.constant 0 : index
    %c0_7 = arith.constant 0 : index
    %10 = vector.load %arg4[%c0_6, %c0_7] : memref<128x128xbf16, #tpu.memory_space<vmem>>, vector<128x128xbf16>
    %cst_8 = arith.constant dense<0.000000e+00> : vector<8x128xf32>
    %11 = tpu.matmul %9, %10, %cst_8 {dimension_numbers = #tpu.dot_dimension_numbers<[1], [0], [0], [1], [0, 0, 1, 1], [], []>} : vector<8x128xbf16>, vector<128x128xbf16>, vector<8x128xf32> -> vector<8x128xf32>
    %c0_9 = arith.constant 0 : index
    %c0_10 = arith.constant 0 : index
    %12 = vector.load %arg5[%c0_9, %c0_10] : memref<1x128xf32, #tpu.memory_space<vmem>>, vector<1x128xf32>
    %13 = vector.broadcast %12 : vector<1x128xf32> to vector<8x128xf32>
    %14 = arith.addf %11, %13 : vector<8x128xf32>
    %cst_11 = arith.constant 0.000000e+00 : f32
    %15 = vector.broadcast %cst_11 : f32 to vector<8x128xf32>
    %16 = arith.maximumf %14, %15 : vector<8x128xf32>
    %17 = arith.truncf %16 : vector<8x128xf32> to vector<8x128xbf16>
    %c0_12 = arith.constant 0 : index
    %c0_13 = arith.constant 0 : index
    %18 = vector.load %arg6[%c0_12, %c0_13] : memref<128x4xbf16, #tpu.memory_space<vmem>>, vector<128x4xbf16>
    %cst_14 = arith.constant dense<0.000000e+00> : vector<8x4xf32>
    %19 = tpu.matmul %17, %18, %cst_14 {dimension_numbers = #tpu.dot_dimension_numbers<[1], [0], [0], [1], [0, 0, 1, 1], [], []>} : vector<8x128xbf16>, vector<128x4xbf16>, vector<8x4xf32> -> vector<8x4xf32>
    %c0_15 = arith.constant 0 : index
    %c0_16 = arith.constant 0 : index
    %20 = vector.load %arg7[%c0_15, %c0_16] : memref<1x4xf32, #tpu.memory_space<vmem>>, vector<1x4xf32>
    %21 = vector.broadcast %20 : vector<1x4xf32> to vector<8x4xf32>
    %22 = arith.addf %19, %21 : vector<8x4xf32>
    %cst_17 = arith.constant -5.000000e+03 : f32
    %cst_18 = arith.constant 1.700000e+04 : f32
    %23 = vector.broadcast %cst_17 : f32 to vector<8x4xf32>
    %24 = arith.maximumf %23, %22 : vector<8x4xf32>
    %25 = vector.broadcast %cst_18 : f32 to vector<8x4xf32>
    %26 = arith.minimumf %25, %24 : vector<8x4xf32>
    %c0_19 = arith.constant 0 : index
    %c0_20 = arith.constant 0 : index
    %27 = vector.load %arg8[%c0_19, %c0_20] : memref<8x4xf32, #tpu.memory_space<vmem>>, vector<8x4xf32>
    tpu.vector_store %arg8[%c0_19, %c0_20], %26 {strides = array<i32>} : memref<8x4xf32, #tpu.memory_space<vmem>>, vector<8x4xf32>,
    return
  }
  func.func @transform_0(%arg0: i32) -> (i32, i32) {
    %c0_i32 = arith.constant 0 : i32
    %c0_i32_0 = arith.constant 0 : i32
    return %arg0, %c0_i32 : i32, i32
  }
  func.func @transform_1(%arg0: i32) -> (i32, i32) {
    %c0_i32 = arith.constant 0 : i32
    %c0_i32_0 = arith.constant 0 : i32
    %c0_i32_1 = arith.constant 0 : i32
    return %c0_i32, %c0_i32_0 : i32, i32
  }
  func.func @transform_2(%arg0: i32) -> (i32, i32) {
    %c0_i32 = arith.constant 0 : i32
    %c0_i32_0 = arith.constant 0 : i32
    %c0_i32_1 = arith.constant 0 : i32
    return %c0_i32, %c0_i32_0 : i32, i32
  }
  func.func @transform_3(%arg0: i32) -> (i32, i32) {
    %c0_i32 = arith.constant 0 : i32
    %c0_i32_0 = arith.constant 0 : i32
    %c0_i32_1 = arith.constant 0 : i32
    return %c0_i32, %c0_i32_0 : i32, i32
  }
  func.func @transform_4(%arg0: i32) -> (i32, i32) {
    %c0_i32 = arith.constant 0 : i32
    %c0_i32_0 = arith.constant 0 : i32
    %c0_i32_1 = arith.constant 0 : i32
    return %c0_i32, %c0_i32_0 : i32, i32
  }
  func.func @transform_5(%arg0: i32) -> (i32, i32) {
    %c0_i32 = arith.constant 0 : i32
    %c0_i32_0 = arith.constant 0 : i32
    %c0_i32_1 = arith.constant 0 : i32
    return %c0_i32, %c0_i32_0 : i32, i32
  }
  func.func @transform_6(%arg0: i32) -> (i32, i32) {
    %c0_i32 = arith.constant 0 : i32
    %c0_i32_0 = arith.constant 0 : i32
    %c0_i32_1 = arith.constant 0 : i32
    return %c0_i32, %c0_i32_0 : i32, i32
  }
  func.func @transform_7(%arg0: i32) -> (i32, i32) {
    %c0_i32 = arith.constant 0 : i32
    %c0_i32_0 = arith.constant 0 : i32
    return %arg0, %c0_i32 : i32, i32
  }
}

</mosaic_0001>

<bundles_post_ra>
// kernel: tpu_custom_call.1
= control target key start
LH: loop header
LB: loop body
LE: loop exit
PB: predicated region body
PF: predicated region fallthrough
CT: control target
= control target key end

     0   :  { %12 = vsyncpa [#allocation3], 0  ;;  %s636_s0 = inlined_call_operand.hbm [shape: f32[8,16], index: 0, kind: input, shape index: {}]   ;;  %s637_s1 = inlined_call_operand.hbm [shape: bf16[16,128], index: 1, kind: input, shape index: {}]   ;;  %s638_s2 = inlined_call_operand.vmem [shape: f32[1,128], index: 2, kind: input, shape index: {}]   ;;  %s639_s3 = inlined_call_operand.vmem [shape: bf16[128,128], index: 3, kind: input, shape index: {}]   ;;  %s640_s4 = inlined_call_operand.vmem [shape: f32[1,128], index: 4, kind: input, shape index: {}]   ;;  %s641_s5 = inlined_call_operand.vmem [shape: bf16[128,4], index: 5, kind: input, shape index: {}]   ;;  %s642_s6 = inlined_call_operand.vmem [shape: f32[1,4], index: 6, kind: input, shape index: {}]   ;;  %s643_s7 = inlined_call_operand.vmem [shape: f32[8,4], index: 7, kind: output, shape index: {}]  }
   0x1   :  { %13 = vsyncpa [#allocation5], 0  ;;  %s504_s24 = smov [#allocation2]   ;;  %s505_s26 = smov [#allocation4]  }
   0x2   :  { %s20_s25 = sshll.u32 %s504_s24, 4  ;;  %s29_s27 = sshll.u32 %s505_s26, 4  ;;  %s21_s25 = int_to_ptr.vmem [resolvable:$true] %s20_s25  ;;  %s30_s27 = int_to_ptr.vmem [resolvable:$true] %s29_s27 }
   0x3   :  { %s468_s28 = scalar_lea.vmem %s21_s25, 128  ;;  %p473_p1 = scmp.lt.s32.totalorder %s21_s25, %s21_s25 }
   0x4   :  { %p469_p0 = scmp.ne.s32.totalorder %s21_s25, %s468_s28  ;;  %p474_p2 = scmp.lt.s32.totalorder %s468_s28, %s468_s28 }
   0x6   :  { %p475_p3 = por %p474_p2, %p473_p1 }
   0x8   :  { %p476_p4 = pnand %p475_p3, %p469_p0 }
   0xa   :  { %479 = shalt.err (!%p476_p4)
}
   0xb   :  { %23 = dma.hbm_to_vmem [thread:$0]  %s636_s0, 128, %s21_s25, [#allocation3]  }
   0xc   :  { %s488_s8 = scalar_lea.vmem %s30_s27, 128  ;;  %p493_p6 = scmp.lt.s32.totalorder %s30_s27, %s30_s27 }
   0xd   :  { %p489_p5 = scmp.ne.s32.totalorder %s30_s27, %s488_s8  ;;  %p494_p7 = scmp.lt.s32.totalorder %s488_s8, %s488_s8 }
   0xf   :  { %p495_p8 = por %p494_p7, %p493_p6 }
  0x11   :  { %p496_p9 = pnand %p495_p8, %p489_p5 }
  0x13   :  { %499 = shalt.err (!%p496_p9)
}
  0x14   :  { %s506_s9 = smov 64   ;;  %s507_s10 = smov 4  }
  0x15   :  { %35 = dma.hbm_to_vmem [thread:$0]  %s637_s1, 128, %s30_s27, [#allocation5], %s506_s9, %s506_s9, %s507_s10  }
  0x16   :  { %500 = dma.done.wait [#allocation3], 128  }
  0x17   :  { %501 = vsyncadd [#allocation3], 4294967168 }
  0x18   :  { %502 = dma.done.wait [#allocation5], 128  }
  0x19   :  { %503 = vsyncadd [#allocation5], 4294967168  ;;  %v508_v0 = vmov 0.0   ;;  %vm509_vm0 = vmmov 0   ;;  %v443_v1 = vld [vmem:[#allocation4] sm:$0xff]   ;;  %v53_v2 = vld [vmem:[#allocation2] sm:$0xff] }
  0x1a   :  { %391 = vmatprep.subr.bf16.mxu0 %v508_v0  ;;  %393 = vmatprep.mubr.msk.bf16.mxu0 %vm509_vm0, %v508_v0  ;;  %v54_v3 = vpack.c.bf16 %v53_v2, %v53_v2  ;;  %vm70_vm1 = vcmask 130048   ;;  %v444_v4 = vld [vmem:[%s639_s3 + $0x38] sm:$0xff]   ;;  %v445_v5 = vld [vmem:[%s639_s3 + $0x30] sm:$0xff]   ;;  %v446_v6 = vld [vmem:[%s639_s3 + $0x28] sm:$0xff]   ;;  %vm342_vm2 = vcmask 31744  }
  0x1b   :  { %397 = vmatprep.subr.bf16.mxu1 %v508_v0  ;;  %413 = vmatprep.mubr.msk.bf16.mxu1 %vm509_vm0, %v508_v0  ;;  %v447_v7 = vld [vmem:[%s639_s3 + $0x20] sm:$0xff]   ;;  %v448_v8 = vld [vmem:[%s639_s3 + $0x18] sm:$0xff]   ;;  %v449_v9 = vld [vmem:[%s639_s3 + $0x10] sm:$0xff]  }
  0x1c   :  { %392 = vmatpush3.bf16.msra.mxu0 %v443_v1  ;;  %398 = vmatpush3.bf16.msra.mxu1 %v444_v4  ;;  %v450_v10 = vld [vmem:[%s639_s3 + $0x8] sm:$0xff]   ;;  %v451_v11 = vld [vmem:[%s639_s3] sm:$0xff]   ;;  %v452_v12 = vld [vmem:[%s641_s5 + $0x38] sm:$0xff]  }
  0x1d   :  { %417 = vmatprep.subr.bf16.mxu0 %v508_v0  ;;  %399 = vmatprep.subr.bf16.mxu1 %v508_v0  ;;  %v453_v13 = vld [vmem:[%s641_s5 + $0x30] sm:$0xff]   ;;  %v454_v14 = vld [vmem:[%s641_s5 + $0x28] sm:$0xff]   ;;  %v455_v15 = vld [vmem:[%s641_s5 + $0x20] sm:$0xff]  }
  0x1e   :  { %v456_v16 = vld [vmem:[%s641_s5 + $0x18] sm:$0xff]   ;;  %v457_v17 = vld [vmem:[%s641_s5 + $0x10] sm:$0xff]   ;;  %v350_v18 = vld [vmem:[%s638_s2] ss:$0 sm:$0xff] }
  0x1f   :  { %394 = vmatmul.mubr.msk.bf16.vlgmr.msra.gmra.mxu0 %vm70_vm1, %v54_v3  ;;  %v458_v26 = vld [vmem:[%s641_s5 + $0x8] sm:$0xff]   ;;  %v459_v27 = vld [vmem:[%s641_s5] sm:$0xff]  }
  0x20   :  { %433 = vmatprep.mubr.msk.bf16.mxu0 %vm509_vm0, %v508_v0  ;;  %400 = vmatpush3.bf16.msra.mxu1 %v445_v5  ;;  %v353_v28 = vld [vmem:[%s640_s4] ss:$0 sm:$0xff] }
  0x21   :  { %401 = vmatprep.subr.bf16.mxu1 %v508_v0  ;;  %418 = vmatpush3.bf16.msra.mxu0 %v452_v12  ;;  %v362_v36 = vld [vmem:[%s642_s6] ss:$0 sm:$0xff] }
  0x22   :  { %419 = vmatprep.subr.bf16.mxu0 %v508_v0 }
  0x24   :  { %402 = vmatpush3.bf16.msra.mxu1 %v446_v6 }
  0x25   :  { %403 = vmatprep.subr.bf16.mxu1 %v508_v0  ;;  %420 = vmatpush3.bf16.msra.mxu0 %v453_v13 }
  0x26   :  { %421 = vmatprep.subr.bf16.mxu0 %v508_v0 }
  0x28   :  { %404 = vmatpush3.bf16.msra.mxu1 %v447_v7 }
  0x29   :  { %405 = vmatprep.subr.bf16.mxu1 %v508_v0  ;;  %422 = vmatpush3.bf16.msra.mxu0 %v454_v14 }
  0x2a   :  { %423 = vmatprep.subr.bf16.mxu0 %v508_v0 }
  0x2c   :  { %406 = vmatpush3.bf16.msra.mxu1 %v448_v8 }
  0x2d   :  { %407 = vmatprep.subr.bf16.mxu1 %v508_v0  ;;  %424 = vmatpush3.bf16.msra.mxu0 %v455_v15 }
  0x2e   :  { %425 = vmatprep.subr.bf16.mxu0 %v508_v0 }
  0x30   :  { %408 = vmatpush3.bf16.msra.mxu1 %v449_v9 }
  0x31   :  { %409 = vmatprep.subr.bf16.mxu1 %v508_v0  ;;  %426 = vmatpush3.bf16.msra.mxu0 %v456_v16 }
  0x32   :  { %427 = vmatprep.subr.bf16.mxu0 %v508_v0 }
  0x34   :  { %410 = vmatpush3.bf16.msra.mxu1 %v450_v10 }
  0x35   :  { %411 = vmatprep.subr.bf16.mxu1 %v508_v0  ;;  %428 = vmatpush3.bf16.msra.mxu0 %v457_v17 }
  0x36   :  { %429 = vmatprep.subr.bf16.mxu0 %v508_v0 }
  0x38   :  { %412 = vmatpush3.bf16.msra.mxu1 %v451_v11 }
  0x39   :  { %430 = vmatpush3.bf16.msra.mxu0 %v458_v26 }
  0x3a   :  { %431 = vmatprep.subr.bf16.mxu0 %v508_v0 }
  0x3d   :  { %432 = vmatpush3.bf16.msra.mxu0 %v459_v27 }
  0xdf   :  { %v108_v19 = vpop.f32.mrf.mxu0 }
  0xe0   :  { %v109_v20 = vadd.f32 %v350_v18, %v108_v19 }
  0xe1   :  { %v395_v21 = vpop.f32.mrf.mxu0 }
  0xe2   :  { %v114_v22 = vmax.f32 %v109_v20, 0.0 }
  0xe3   :  { %v111_v23 = vpop.f32.mrf.mxu0 }
  0xe4   :  { %v115_v24 = vpack.c.bf16 %v114_v22, %v114_v22 }
  0xe5   :  { %v396_v25 = vpop.f32.mrf.mxu0 }
  0xe6   :  { %414 = vmatmul.mubr.bf16.vlgmr.msra.gmra.mxu1 %v115_v24 }
 0x1a6   :  { %v221_v29 = vpop.f32.mrf.mxu1 }
 0x1a7   :  { %v222_v30 = vadd.f32 %v353_v28, %v221_v29 }
 0x1a8   :  { %v415_v31 = vpop.f32.mrf.mxu1 }
 0x1a9   :  { %v227_v32 = vmax.f32 %v222_v30, 0.0 }
 0x1aa   :  { %v224_v33 = vpop.f32.mrf.mxu1 }
 0x1ab   :  { %v228_v34 = vpack.c.bf16 %v227_v32, %v227_v32 }
 0x1ac   :  { %v416_v35 = vpop.f32.mrf.mxu1 }
 0x1ad   :  { %434 = vmatmul.mubr.bf16.vlgmr.msra.gmra.mxu0 %v228_v34 }
 0x26d   :  { %v334_v37 = vpop.f32.mrf.mxu0 }
 0x26e   :  { %v335_v38 = vadd.f32 %v362_v36, %v334_v37 }
 0x26f   :  { %v435_v39 = vpop.f32.mrf.mxu0 }
 0x270   :  { %v340_v40 = vmax.f32 %v335_v38, -5000.0 }
 0x271   :  { %v337_v41 = vpop.f32.mrf.mxu0 }
 0x272   :  { %v341_v42 = vmin.f32 %v340_v40, 17000.0 }
 0x273   :  { %v436_v43 = vpop.f32.mrf.mxu0 }
 0x274   :  { %343 = vst.msk [vmem:[%s643_s7] sm:$0xff] %vm342_vm2, %v341_v42 }
 0x275   :  { %348 = vsyncpa [#allocation3], 1 }
 0x276   :  { %349 = vsyncpa [#allocation5], 1 }

</bundles_post_ra>
